<compile_context>
chip_gen: v6e
topology: v6e:2x2x1
jax: 0.10.0
libtpu: 0.0.40
codegen_flags: <defaults>
</compile_context>

<pallas_src>
import jax
import jax.numpy as jnp
from jax.experimental import pallas as pl
from jax.experimental.pallas import tpu as pltpu

N_FEATURES = 8
HIDDEN = 30
ACTION_BOUND = (-2.0, 2.0)

MAX_TILE_B = 256        # cap on rows per grid step (256*9*4 B ~ 9 KiB, trivial VMEM)

# packed parameter-slab layout (rows aligned to 8-sublane boundaries)
ROW_W1 = 0              # rows 0..7 : W1^T           (n_features, 30)
ROW_B1 = 8              # row  8    : b1             (30,)
ROW_WMU = 16            # row  16   : mu head weight (30,)
ROW_WSIG = 17           # row  17   : sigma head w.  (30,)
ROW_BHEAD = 24          # row  24   : [bmu, bsig] in cols 0, 1
SLAB_ROWS = 32
SLAB_COLS = 32


def _round_up(x, m):
    return ((x + m - 1) // m) * m


def actor_kernel(sz_ref, slab_ref, out_ref):
    tile_b = out_ref.shape[0]

    sz = sz_ref[...]                                  # (tile_b, n_features + 1)
    s = sz[:, :N_FEATURES]                            # (tile_b, 8)
    z = sz[:, N_FEATURES:N_FEATURES + 1]              # (tile_b, 1) noise

    # static Ref slices: only the live parameter rows are loaded into vregs
    w1 = slab_ref[ROW_W1:ROW_W1 + N_FEATURES, :HIDDEN]        # (8, 30)
    b1 = slab_ref[ROW_B1:ROW_B1 + 1, :HIDDEN]                 # (1, 30)
    wmu = slab_ref[ROW_WMU:ROW_WMU + 1, :HIDDEN]              # (1, 30)
    wsig = slab_ref[ROW_WSIG:ROW_WSIG + 1, :HIDDEN]           # (1, 30)
    bmu = slab_ref[ROW_BHEAD:ROW_BHEAD + 1, 0:1]              # (1, 1)
    bsig = slab_ref[ROW_BHEAD:ROW_BHEAD + 1, 1:2]             # (1, 1)

    # layer 1 on the VPU: h = relu(sum_i s[:, i] * W1^T[i, :] + b1)   (no MXU:
    # an 8x30 contraction is cheaper as 8 broadcast-MACs than a padded matmul)
    h = s[:, 0:1] * w1[0:1, :]
    for i in range(1, N_FEATURES):                    # static unroll, 8 steps
        h = h + s[:, i:i + 1] * w1[i:i + 1, :]
    h = jnp.maximum(h + b1, 0.0)                      # (tile_b, 30)

    # fused heads: VPU multiply + XLU lane reduction (mu and sigma together)
    mu_lin = jnp.sum(h * wmu, axis=-1, keepdims=True) + bmu       # (tile_b, 1)
    sig_lin = jnp.sum(h * wsig, axis=-1, keepdims=True) + bsig    # (tile_b, 1)

    mu = jnp.tanh(mu_lin)
    # numerically-stable softplus: log(exp(x)+1) without overflow for large x
    sigma = jnp.where(sig_lin > 20.0, sig_lin,
                      jnp.log1p(jnp.exp(jnp.minimum(sig_lin, 20.0))))

    # Normal(mu*2, sigma+0.1) reparameterized sample, clipped to action bounds
    action = jnp.clip(mu * 2.0 + (sigma + 0.1) * z,
                      ACTION_BOUND[0], ACTION_BOUND[1])

    # single lane-contiguous store: lane 0 = action, lane 1 = mu, lane 2 = sigma
    lane = jax.lax.broadcasted_iota(jnp.int32, (tile_b, 3), 1)
    out_ref[...] = jnp.where(lane == 0, action,
                             jnp.where(lane == 1, mu, sigma))


def actor_forward(s_batch, z_batch, slab):
    """s_batch: (B, n_features) f32, z_batch: (B,) standard-normal noise,
    slab: packed (SLAB_ROWS, SLAB_COLS) parameter slab.
    Returns (action, mu, sigma), each shaped (B,)."""
    B = s_batch.shape[0]
    tile_b = min(MAX_TILE_B, _round_up(B, 8))         # sublane-aligned batch tile
    Bp = _round_up(B, tile_b)                          # padded batch

    sz = jnp.concatenate(
        [s_batch.astype(jnp.float32), z_batch.astype(jnp.float32)[:, None]],
        axis=1)                                        # (B, n_features + 1)
    if Bp != B:
        sz = jnp.pad(sz, ((0, Bp - B), (0, 0)))

    out = pl.pallas_call(
        actor_kernel,
        out_shape=jax.ShapeDtypeStruct((Bp, 3), jnp.float32),
        grid_spec=pltpu.PrefetchScalarGridSpec(
            num_scalar_prefetch=0,
            grid=(Bp // tile_b,),
            in_specs=[
                pl.BlockSpec((tile_b, N_FEATURES + 1), lambda i: (i, 0)),
                pl.BlockSpec((SLAB_ROWS, SLAB_COLS), lambda i: (0, 0)),  # resident
            ],
            out_specs=pl.BlockSpec((tile_b, 3), lambda i: (i, 0)),
        ),
        compiler_params=pltpu.CompilerParams(
            dimension_semantics=("parallel",)),
    )(sz, slab)

    out = out[:B]
    return out[:, 0], out[:, 1], out[:, 2]


def init_params(key, n_features, hidden):
    """PyTorch-Linear-like uniform init. W1 returned pre-transposed (in, out);
    head weights as flat (hidden,) rows, head biases as scalars."""
    k1, k2, k3, k4, k5, k6 = jax.random.split(key, 6)
    bd1 = 1.0 / jnp.sqrt(n_features)
    bd2 = 1.0 / jnp.sqrt(hidden)
    w1_t = jax.random.uniform(k1, (n_features, hidden), jnp.float32, -bd1, bd1)
    b1 = jax.random.uniform(k2, (hidden,), jnp.float32, -bd1, bd1)
    wmu = jax.random.uniform(k3, (hidden,), jnp.float32, -bd2, bd2)
    bmu = jax.random.uniform(k4, (), jnp.float32, -bd2, bd2)
    wsig = jax.random.uniform(k5, (hidden,), jnp.float32, -bd2, bd2)
    bsig = jax.random.uniform(k6, (), jnp.float32, -bd2, bd2)
    return w1_t, b1, wmu, bmu, wsig, bsig


def pack_params(w1_t, b1, wmu, bmu, wsig, bsig):
    """Pack all Actor parameters into one (32, 32) f32 slab (single VMEM input)."""
    slab = jnp.zeros((SLAB_ROWS, SLAB_COLS), jnp.float32)
    slab = slab.at[ROW_W1:ROW_W1 + N_FEATURES, :HIDDEN].set(w1_t)
    slab = slab.at[ROW_B1, :HIDDEN].set(b1)
    slab = slab.at[ROW_WMU, :HIDDEN].set(wmu)
    slab = slab.at[ROW_WSIG, :HIDDEN].set(wsig)
    slab = slab.at[ROW_BHEAD, 0].set(bmu)
    slab = slab.at[ROW_BHEAD, 1].set(bsig)
    return slab


if __name__ == "__main__":
    key = jax.random.PRNGKey(0)
    k_param, k_state, k_noise = jax.random.split(key, 3)

    B = 16  # small batch; fits one adaptive tile (tile_b = 16, single grid step)
    w1_t, b1, wmu, bmu, wsig, bsig = init_params(k_param, N_FEATURES, HIDDEN)
    slab = pack_params(w1_t, b1, wmu, bmu, wsig, bsig)

    s_batch = jax.random.normal(k_state, (B, N_FEATURES), dtype=jnp.float32)
    # standard-normal noise for the reparameterized Normal(mu*2, sigma+0.1).sample()
    # TODO(synk): torch draws this from self.normal_dist inside forward; here the
    #             noise is supplied by the host (reparameterization), same math.
    z_batch = jax.random.normal(k_noise, (B,), dtype=jnp.float32)

    action, mu, sigma = actor_forward(s_batch, z_batch, slab)
    jax.block_until_ready((action, mu, sigma))

    # pure-JAX reference of the same forward path
    h_ref = jnp.maximum(s_batch @ w1_t + b1[None, :], 0.0)            # (B, 30)
    mu_ref = jnp.tanh(h_ref @ wmu + bmu)                              # (B,)
    sig_lin_ref = h_ref @ wsig + bsig
    sigma_ref = jnp.where(sig_lin_ref > 20.0, sig_lin_ref,
                          jnp.log1p(jnp.exp(jnp.minimum(sig_lin_ref, 20.0))))
    act_ref = jnp.clip(mu_ref * 2.0 + (sigma_ref + 0.1) * z_batch,
                       ACTION_BOUND[0], ACTION_BOUND[1])

    assert jnp.allclose(mu, mu_ref, atol=1e-5), (mu, mu_ref)
    assert jnp.allclose(sigma, sigma_ref, atol=1e-5), (sigma, sigma_ref)
    assert jnp.allclose(action, act_ref, atol=1e-5), (action, act_ref)

    print("KERNEL_OK")
</pallas_src>

<mosaic_0001>
module attributes {stable_mosaic.version = 11 : i64} {
  func.func @actor_kernel(%arg0: i32, %arg1: memref<16x9xf32, #tpu.memory_space<vmem>>, %arg2: memref<32x32xf32, #tpu.memory_space<vmem>>, %arg3: memref<16x3xf32, #tpu.memory_space<vmem>>) attributes {dimension_semantics = [#tpu.dimension_semantics<parallel>], iteration_bounds = array<i64: 1>, scalar_prefetch = 0 : i64, scratch_operands = 0 : i64, tpu.core_type = #tpu.core_type<tc>, window_params = [{transform_indices = @transform_0, window_bounds = array<i64: 16, 9>}, {pipeline_mode = #tpu.pipeline_mode<synchronous>, transform_indices = @transform_1, window_bounds = array<i64: 32, 32>}, {transform_indices = @transform_2, window_bounds = array<i64: 16, 3>}]} {
    %c0 = arith.constant 0 : index
    %c0_0 = arith.constant 0 : index
    %0 = vector.load %arg1[%c0, %c0_0] : memref<16x9xf32, #tpu.memory_space<vmem>>, vector<16x9xf32>
    %1 = vector.extract_strided_slice %0 {offsets = [0, 0], sizes = [16, 8], strides = [1, 1]} : vector<16x9xf32> to vector<16x8xf32>
    %2 = vector.extract_strided_slice %0 {offsets = [0, 8], sizes = [16, 1], strides = [1, 1]} : vector<16x9xf32> to vector<16x1xf32>
    %c0_1 = arith.constant 0 : index
    %c0_2 = arith.constant 0 : index
    %3 = vector.load %arg2[%c0_1, %c0_2] : memref<32x32xf32, #tpu.memory_space<vmem>>, vector<8x30xf32>
    %c8 = arith.constant 8 : index
    %c0_3 = arith.constant 0 : index
    %4 = vector.load %arg2[%c8, %c0_3] : memref<32x32xf32, #tpu.memory_space<vmem>>, vector<1x30xf32>
    %c16 = arith.constant 16 : index
    %c0_4 = arith.constant 0 : index
    %5 = vector.load %arg2[%c16, %c0_4] : memref<32x32xf32, #tpu.memory_space<vmem>>, vector<1x30xf32>
    %c17 = arith.constant 17 : index
    %c0_5 = arith.constant 0 : index
    %6 = vector.load %arg2[%c17, %c0_5] : memref<32x32xf32, #tpu.memory_space<vmem>>, vector<1x30xf32>
    %c24 = arith.constant 24 : index
    %c0_6 = arith.constant 0 : index
    %7 = vector.load %arg2[%c24, %c0_6] : memref<32x32xf32, #tpu.memory_space<vmem>>, vector<1x1xf32>
    %c24_7 = arith.constant 24 : index
    %c1 = arith.constant 1 : index
    %8 = vector.load %arg2[%c24_7, %c1] : memref<32x32xf32, #tpu.memory_space<vmem>>, vector<1x1xf32>
    %9 = vector.extract_strided_slice %1 {offsets = [0, 0], sizes = [16, 1], strides = [1, 1]} : vector<16x8xf32> to vector<16x1xf32>
    %10 = vector.extract_strided_slice %3 {offsets = [0, 0], sizes = [1, 30], strides = [1, 1]} : vector<8x30xf32> to vector<1x30xf32>
    %11 = vector.broadcast %9 : vector<16x1xf32> to vector<16x30xf32>
    %12 = vector.broadcast %10 : vector<1x30xf32> to vector<16x30xf32>
    %13 = arith.mulf %11, %12 : vector<16x30xf32>
    %14 = vector.extract_strided_slice %1 {offsets = [0, 1], sizes = [16, 1], strides = [1, 1]} : vector<16x8xf32> to vector<16x1xf32>
    %15 = vector.extract_strided_slice %3 {offsets = [1, 0], sizes = [1, 30], strides = [1, 1]} : vector<8x30xf32> to vector<1x30xf32>
    %16 = vector.broadcast %14 : vector<16x1xf32> to vector<16x30xf32>
    %17 = vector.broadcast %15 : vector<1x30xf32> to vector<16x30xf32>
    %18 = arith.mulf %16, %17 : vector<16x30xf32>
    %19 = arith.addf %13, %18 : vector<16x30xf32>
    %20 = vector.extract_strided_slice %1 {offsets = [0, 2], sizes = [16, 1], strides = [1, 1]} : vector<16x8xf32> to vector<16x1xf32>
    %21 = vector.extract_strided_slice %3 {offsets = [2, 0], sizes = [1, 30], strides = [1, 1]} : vector<8x30xf32> to vector<1x30xf32>
    %22 = vector.broadcast %20 : vector<16x1xf32> to vector<16x30xf32>
    %23 = vector.broadcast %21 : vector<1x30xf32> to vector<16x30xf32>
    %24 = arith.mulf %22, %23 : vector<16x30xf32>
    %25 = arith.addf %19, %24 : vector<16x30xf32>
    %26 = vector.extract_strided_slice %1 {offsets = [0, 3], sizes = [16, 1], strides = [1, 1]} : vector<16x8xf32> to vector<16x1xf32>
    %27 = vector.extract_strided_slice %3 {offsets = [3, 0], sizes = [1, 30], strides = [1, 1]} : vector<8x30xf32> to vector<1x30xf32>
    %28 = vector.broadcast %26 : vector<16x1xf32> to vector<16x30xf32>
    %29 = vector.broadcast %27 : vector<1x30xf32> to vector<16x30xf32>
    %30 = arith.mulf %28, %29 : vector<16x30xf32>
    %31 = arith.addf %25, %30 : vector<16x30xf32>
    %32 = vector.extract_strided_slice %1 {offsets = [0, 4], sizes = [16, 1], strides = [1, 1]} : vector<16x8xf32> to vector<16x1xf32>
    %33 = vector.extract_strided_slice %3 {offsets = [4, 0], sizes = [1, 30], strides = [1, 1]} : vector<8x30xf32> to vector<1x30xf32>
    %34 = vector.broadcast %32 : vector<16x1xf32> to vector<16x30xf32>
    %35 = vector.broadcast %33 : vector<1x30xf32> to vector<16x30xf32>
    %36 = arith.mulf %34, %35 : vector<16x30xf32>
    %37 = arith.addf %31, %36 : vector<16x30xf32>
    %38 = vector.extract_strided_slice %1 {offsets = [0, 5], sizes = [16, 1], strides = [1, 1]} : vector<16x8xf32> to vector<16x1xf32>
    %39 = vector.extract_strided_slice %3 {offsets = [5, 0], sizes = [1, 30], strides = [1, 1]} : vector<8x30xf32> to vector<1x30xf32>
    %40 = vector.broadcast %38 : vector<16x1xf32> to vector<16x30xf32>
    %41 = vector.broadcast %39 : vector<1x30xf32> to vector<16x30xf32>
    %42 = arith.mulf %40, %41 : vector<16x30xf32>
    %43 = arith.addf %37, %42 : vector<16x30xf32>
    %44 = vector.extract_strided_slice %1 {offsets = [0, 6], sizes = [16, 1], strides = [1, 1]} : vector<16x8xf32> to vector<16x1xf32>
    %45 = vector.extract_strided_slice %3 {offsets = [6, 0], sizes = [1, 30], strides = [1, 1]} : vector<8x30xf32> to vector<1x30xf32>
    %46 = vector.broadcast %44 : vector<16x1xf32> to vector<16x30xf32>
    %47 = vector.broadcast %45 : vector<1x30xf32> to vector<16x30xf32>
    %48 = arith.mulf %46, %47 : vector<16x30xf32>
    %49 = arith.addf %43, %48 : vector<16x30xf32>
    %50 = vector.extract_strided_slice %1 {offsets = [0, 7], sizes = [16, 1], strides = [1, 1]} : vector<16x8xf32> to vector<16x1xf32>
    %51 = vector.extract_strided_slice %3 {offsets = [7, 0], sizes = [1, 30], strides = [1, 1]} : vector<8x30xf32> to vector<1x30xf32>
    %52 = vector.broadcast %50 : vector<16x1xf32> to vector<16x30xf32>
    %53 = vector.broadcast %51 : vector<1x30xf32> to vector<16x30xf32>
    %54 = arith.mulf %52, %53 : vector<16x30xf32>
    %55 = arith.addf %49, %54 : vector<16x30xf32>
    %56 = vector.broadcast %4 : vector<1x30xf32> to vector<16x30xf32>
    %57 = arith.addf %55, %56 : vector<16x30xf32>
    %cst = arith.constant 0.000000e+00 : f32
    %58 = vector.broadcast %cst : f32 to vector<16x30xf32>
    %59 = arith.maximumf %57, %58 : vector<16x30xf32>
    %60 = vector.broadcast %5 : vector<1x30xf32> to vector<16x30xf32>
    %61 = arith.mulf %59, %60 : vector<16x30xf32>
    %cst_8 = arith.constant dense<0.000000e+00> : vector<16xf32>
    %62 = vector.multi_reduction <add>, %61, %cst_8 [1] : vector<16x30xf32> to vector<16xf32>
    %63 = vector.shape_cast %62 : vector<16xf32> to vector<16x1xf32>
    %64 = vector.broadcast %7 : vector<1x1xf32> to vector<16x1xf32>
    %65 = arith.addf %63, %64 : vector<16x1xf32>
    %66 = vector.broadcast %6 : vector<1x30xf32> to vector<16x30xf32>
    %67 = arith.mulf %59, %66 : vector<16x30xf32>
    %cst_9 = arith.constant dense<0.000000e+00> : vector<16xf32>
    %68 = vector.multi_reduction <add>, %67, %cst_9 [1] : vector<16x30xf32> to vector<16xf32>
    %69 = vector.shape_cast %68 : vector<16xf32> to vector<16x1xf32>
    %70 = vector.broadcast %8 : vector<1x1xf32> to vector<16x1xf32>
    %71 = arith.addf %69, %70 : vector<16x1xf32>
    %72 = math.tanh %65 : vector<16x1xf32>
    %cst_10 = arith.constant 2.000000e+01 : f32
    %73 = vector.broadcast %cst_10 : f32 to vector<16x1xf32>
    %74 = arith.cmpf ogt, %71, %73 : vector<16x1xf32>
    %cst_11 = arith.constant 2.000000e+01 : f32
    %75 = vector.broadcast %cst_11 : f32 to vector<16x1xf32>
    %76 = arith.minimumf %71, %75 : vector<16x1xf32>
    %77 = math.exp %76 : vector<16x1xf32>
    %78 = math.log1p %77 : vector<16x1xf32>
    %79 = arith.select %74, %71, %78 : vector<16x1xi1>, vector<16x1xf32>
    %cst_12 = arith.constant 2.000000e+00 : f32
    %80 = vector.broadcast %cst_12 : f32 to vector<16x1xf32>
    %81 = arith.mulf %72, %80 : vector<16x1xf32>
    %cst_13 = arith.constant 1.000000e-01 : f32
    %82 = vector.broadcast %cst_13 : f32 to vector<16x1xf32>
    %83 = arith.addf %79, %82 : vector<16x1xf32>
    %84 = arith.mulf %83, %2 : vector<16x1xf32>
    %85 = arith.addf %81, %84 : vector<16x1xf32>
    %cst_14 = arith.constant -2.000000e+00 : f32
    %cst_15 = arith.constant 2.000000e+00 : f32
    %86 = vector.broadcast %cst_14 : f32 to vector<16x1xf32>
    %87 = arith.maximumf %86, %85 : vector<16x1xf32>
    %88 = vector.broadcast %cst_15 : f32 to vector<16x1xf32>
    %89 = arith.minimumf %88, %87 : vector<16x1xf32>
    %90 = tpu.iota {dimensions = array<i32: 1>} : vector<16x3xi32>
    %c0_i32 = arith.constant 0 : i32
    %91 = vector.broadcast %c0_i32 : i32 to vector<16x3xi32>
    %92 = arith.cmpi eq, %90, %91 : vector<16x3xi32>
    %c1_i32 = arith.constant 1 : i32
    %93 = vector.broadcast %c1_i32 : i32 to vector<16x3xi32>
    %94 = arith.cmpi eq, %90, %93 : vector<16x3xi32>
    %95 = vector.shape_cast %72 : vector<16x1xf32> to vector<16x1xf32>
    %96 = vector.broadcast %95 : vector<16x1xf32> to vector<16x3xf32>
    %97 = vector.shape_cast %79 : vector<16x1xf32> to vector<16x1xf32>
    %98 = vector.broadcast %97 : vector<16x1xf32> to vector<16x3xf32>
    %99 = arith.select %94, %96, %98 : vector<16x3xi1>, vector<16x3xf32>
    %100 = vector.shape_cast %89 : vector<16x1xf32> to vector<16x1xf32>
    %101 = vector.broadcast %100 : vector<16x1xf32> to vector<16x3xf32>
    %102 = arith.select %92, %101, %99 : vector<16x3xi1>, vector<16x3xf32>
    %c0_16 = arith.constant 0 : index
    %c0_17 = arith.constant 0 : index
    %103 = vector.load %arg3[%c0_16, %c0_17] : memref<16x3xf32, #tpu.memory_space<vmem>>, vector<16x3xf32>
    tpu.vector_store %arg3[%c0_16, %c0_17], %102 {strides = array<i32>} : memref<16x3xf32, #tpu.memory_space<vmem>>, vector<16x3xf32>,
    return
  }
  func.func @transform_0(%arg0: i32) -> (i32, i32) {
    %c0_i32 = arith.constant 0 : i32
    %c0_i32_0 = arith.constant 0 : i32
    return %arg0, %c0_i32 : i32, i32
  }
  func.func @transform_1(%arg0: i32) -> (i32, i32) {
    %c0_i32 = arith.constant 0 : i32
    %c0_i32_0 = arith.constant 0 : i32
    %c0_i32_1 = arith.constant 0 : i32
    return %c0_i32, %c0_i32_0 : i32, i32
  }
  func.func @transform_2(%arg0: i32) -> (i32, i32) {
    %c0_i32 = arith.constant 0 : i32
    %c0_i32_0 = arith.constant 0 : i32
    return %arg0, %c0_i32 : i32, i32
  }
}

</mosaic_0001>

<bundles_post_ra>
// kernel: tpu_custom_call.1
= control target key start
LH: loop header
LB: loop body
LE: loop exit
PB: predicated region body
PF: predicated region fallthrough
CT: control target
= control target key end

     0   :  { %7 = vsyncpa [#allocation3], 0  ;;  %s489_s0 = inlined_call_operand.hbm [shape: f32[16,9], index: 0, kind: input, shape index: {}]   ;;  %s490_s1 = inlined_call_operand.hbm [shape: f32[32,32], index: 1, kind: input, shape index: {}]   ;;  %s491_s2 = inlined_call_operand.vmem [shape: f32[16,3], index: 2, kind: output, shape index: {}]  }
   0x1   :  { %8 = vsyncpa [#allocation5], 0  ;;  %s412_s9 = smov [#allocation2]  }
   0x2   :  { %s14_s10 = sshll.u32 %s412_s9, 4  ;;  %s15_s10 = int_to_ptr.vmem [resolvable:$true] %s14_s10 }
   0x3   :  { %s376_s11 = scalar_lea.vmem %s15_s10, 256  ;;  %p381_p1 = scmp.lt.s32.totalorder %s15_s10, %s15_s10 }
   0x4   :  { %p377_p0 = scmp.ne.s32.totalorder %s15_s10, %s376_s11  ;;  %p382_p2 = scmp.lt.s32.totalorder %s376_s11, %s376_s11 }
   0x6   :  { %p383_p3 = por %p382_p2, %p381_p1 }
   0x8   :  { %p384_p4 = pnand %p383_p3, %p377_p0 }
   0xa   :  { %387 = shalt.err (!%p384_p4)
}
   0xb   :  { %s413_s12 = smov 128   ;;  %s414_s13 = smov 8  }
   0xc   :  { %20 = dma.hbm_to_vmem [thread:$0]  %s489_s0, 256, %s15_s10, [#allocation3], %s413_s12, %s413_s12, %s414_s13  }
   0xd   :  { %s415_s16 = smov [#allocation4]  }
   0xe   :  { %s26_s17 = sshll.u32 %s415_s16, 4  ;;  %s27_s17 = int_to_ptr.vmem [resolvable:$true] %s26_s17 }
   0xf   :  { %s396_s18 = scalar_lea.vmem %s27_s17, 512  ;;  %p401_p6 = scmp.lt.s32.totalorder %s27_s17, %s27_s17 }
  0x10   :  { %p397_p5 = scmp.ne.s32.totalorder %s27_s17, %s396_s18  ;;  %p402_p7 = scmp.lt.s32.totalorder %s396_s18, %s396_s18 }
  0x12   :  { %p403_p8 = por %p402_p7, %p401_p6 }
  0x14   :  { %p404_p9 = pnand %p403_p8, %p397_p5 }
  0x16   :  { %407 = shalt.err (!%p404_p9)
}
  0x17   :  { %32 = dma.hbm_to_vmem [thread:$0]  %s490_s1, 512, %s27_s17, [#allocation5], %s413_s12, %s413_s12, %s414_s13  }
  0x18   :  { %408 = dma.done.wait [#allocation3], 256  }
  0x19   :  { %409 = vsyncadd [#allocation3], 4294967040 }
  0x1a   :  { %410 = dma.done.wait [#allocation5], 512  }
  0x1b   :  { %411 = vsyncadd [#allocation5], 4294966784  ;;  %v416_v0 = vmov 1   ;;  %v417_v1 = vmov 0   ;;  %v449_v2 = vld [vmem:[#allocation2] sm:$0xff]  ;;  %v453_v3 = vld [vmem:[#allocation2 + $0x8] sm:$0xff]  ;;  %v56_v12 = vlaneseq }
  0x1c   :  { %339 = vset.pattern.permute.xlu1 %v416_v0  ;;  %338 = vset.pattern.permute.xlu0 %v417_v1  ;;  %v418_v4 = vmov 2   ;;  %v419_v5 = vmov 3   ;;  %v420_v6 = vmov 4   ;;  %v421_v7 = vmov 5   ;;  %v41_v20 = vld [vmem:[#allocation4] sm:$0xff]  ;;  %s424_s0 = smov 121  }
  0x1d   :  { %63 = vperm.xlu1 %339, %v449_v2   ;;  %48 = vperm.xlu0 %338, %v449_v2   ;;  %v422_v8 = vmov 6   ;;  %v423_v9 = vmov 7   ;;  %v57_v15 = vshrl.u32 %v56_v12, 7  ;;  %vm188_vm0 = vcmask 244736   ;;  %s425_s1 = smov 127  }
  0x1e   :  { %vm309_vm7 = vcmask 23552  }
  0x1f   :  { %v72_v18 = vsub.s32 1, %v57_v15  ;;  %v58_v19 = vsub.s32 0, %v57_v15  ;;  %v88_v21 = vsub.s32 2, %v57_v15  ;;  %v104_v24 = vsub.s32 3, %v57_v15 }
  0x20   :  { %v120_v28 = vsub.s32 4, %v57_v15  ;;  %v136_v35 = vsub.s32 5, %v57_v15  ;;  %v152_v42 = vsub.s32 6, %v57_v15  ;;  %v168_v51 = vsub.s32 7, %v57_v15 }
  0x21   :  { %67 = vperm.xlu1 %339, %v453_v3   ;;  %53 = vperm.xlu0 %338, %v453_v3   ;;  %v73_v22 = vrot.slane %v41_v20, %v72_v18  ;;  %v59_v23 = vrot.slane %v41_v20, %v58_v19  ;;  %v89_v27 = vrot.slane %v41_v20, %v88_v21 }
  0x22   :  { %v105_v31 = vrot.slane %v41_v20, %v104_v24  ;;  %v121_v34 = vrot.slane %v41_v20, %v120_v28  ;;  %v137_v46 = vrot.slane %v41_v20, %v136_v35  ;;  %v153_v52 = vrot.slane %v41_v20, %v152_v42 }
  0x23   :  { %v169_v61 = vrot.slane %v41_v20, %v168_v51 }
  0x25   :  { %341 = vset.pattern.permute.xlu1 %v418_v4  ;;  %340 = vset.pattern.permute.xlu0 %v418_v4 }
  0x26   :  { %83 = vperm.xlu1 %341, %v453_v3   ;;  %79 = vperm.xlu0 %340, %v449_v2  }
  0x2a   :  { %342 = vset.pattern.permute.xlu1 %v419_v5  ;;  %343 = vset.pattern.permute.xlu0 %v419_v5 }
  0x2b   :  { %95 = vperm.xlu1 %342, %v449_v2   ;;  %99 = vperm.xlu0 %343, %v453_v3  }
  0x2f   :  { %344 = vset.pattern.permute.xlu1 %v420_v6  ;;  %345 = vset.pattern.permute.xlu0 %v421_v7 }
  0x30   :  { %111 = vperm.xlu1 %344, %v449_v2   ;;  %127 = vperm.xlu0 %345, %v449_v2  }
  0x34   :  { %115 = vperm.xlu1 %344, %v453_v3   ;;  %348 = vset.pattern.permute.xlu0 %v422_v8 }
  0x35   :  { %147 = vperm.xlu0 %348, %v453_v3  }
  0x38   :  { %346 = vset.pattern.permute.xlu1 %v421_v7 }
  0x39   :  { %131 = vperm.xlu1 %346, %v453_v3   ;;  %350 = vset.pattern.permute.xlu0 %v417_v1 }
  0x3d   :  { %347 = vset.pattern.permute.xlu1 %v422_v8 }
  0x3e   :  { %143 = vperm.xlu1 %347, %v449_v2  }
  0x42   :  { %349 = vset.pattern.permute.xlu1 %v423_v9 }
  0x43   :  { %159 = vperm.xlu1 %349, %v449_v2  }
  0x47   :  { %163 = vperm.xlu1 %349, %v453_v3  }
  0x4b   :  { %351 = vset.pattern.permute.xlu1 %v417_v1 }
  0x98   :  { %v64_v10 = vpop.permute.xlu1 %63  ;;  %v49_v13 = vpop.permute.xlu0 %48 }
  0x99   :  { %v74_v29 = vmul.f32 %v73_v22, %v64_v10  ;;  %v60_v30 = vmul.f32 %v59_v23, %v49_v13  ;;  %v318_v10 = vld [vmem:[#allocation4 + $0x8] ss:$0 sm:$0xff] }
  0x9b   :  { %v76_v37 = vadd.f32 %v74_v29, %v60_v30 }
  0x9c   :  { %v68_v11 = vpop.permute.xlu1 %67  ;;  %v54_v16 = vpop.permute.xlu0 %53 }
  0x9d   :  { %v75_v38 = vmul.f32 %v73_v22, %v68_v11  ;;  %v61_v39 = vmul.f32 %v59_v23, %v54_v16 }
  0x9f   :  { %v77_v48 = vadd.f32 %v75_v38, %v61_v39 }
  0xa1   :  { %v84_v14 = vpop.permute.xlu1 %83  ;;  %v80_v26 = vpop.permute.xlu0 %79 }
  0xa2   :  { %v90_v33 = vmul.f32 %v89_v27, %v80_v26  ;;  %v91_v43 = vmul.f32 %v89_v27, %v84_v14  ;;  %v319_v26 = vld [vmem:[#allocation4 + $0x10] ss:$0 sm:$0xff] }
  0xa4   :  { %v92_v44 = vadd.f32 %v90_v33, %v76_v37  ;;  %v93_v53 = vadd.f32 %v91_v43, %v77_v48 }
  0xa6   :  { %v96_v17 = vpop.permute.xlu1 %95  ;;  %v100_v36 = vpop.permute.xlu0 %99 }
  0xa7   :  { %v106_v40 = vmul.f32 %v105_v31, %v96_v17  ;;  %v107_v50 = vmul.f32 %v105_v31, %v100_v36  ;;  %v321_v17 = vld [vmem:[#allocation4 + $0x11] ss:$0 sm:$0xff]  ;;  %v320_v31 = vld [vmem:[#allocation4 + $0x18] ss:$0 sm:$0xff] }
  0xa9   :  { %v108_v49 = vadd.f32 %v106_v40, %v92_v44  ;;  %v109_v58 = vadd.f32 %v107_v50, %v93_v53 }
  0xab   :  { %v112_v25 = vpop.permute.xlu1 %111  ;;  %v128_v47 = vpop.permute.xlu0 %127 }
  0xac   :  { %v122_v45 = vmul.f32 %v121_v34, %v112_v25  ;;  %v138_v55 = vmul.f32 %v137_v46, %v128_v47 }
  0xae   :  { %v124_v54 = vadd.f32 %v122_v45, %v108_v49 }
  0xaf   :  { %v116_v32 = vpop.permute.xlu1 %115 }
  0xb0   :  { %v123_v56 = vmul.f32 %v121_v34, %v116_v32  ;;  %v148_v62 = vpop.permute.xlu0 %147  ;;  %v140_v63 = vadd.f32 %v138_v55, %v124_v54 }
  0xb1   :  { %v155_v7 = vmul.f32 %v153_v52, %v148_v62 }
  0xb2   :  { %v125_v4 = vadd.f32 %v123_v56, %v109_v58 }
  0xb4   :  { %v132_v41 = vpop.permute.xlu1 %131 }
  0xb5   :  { %v139_v59 = vmul.f32 %v137_v46, %v132_v41 }
  0xb7   :  { %v141_v6 = vadd.f32 %v139_v59, %v125_v4 }
  0xb9   :  { %v144_v57 = vpop.permute.xlu1 %143  ;;  %v157_v14 = vadd.f32 %v155_v7, %v141_v6 }
  0xba   :  { %v154_v60 = vmul.f32 %v153_v52, %v144_v57 }
  0xbc   :  { %v156_v8 = vadd.f32 %v154_v60, %v140_v63 }
  0xbe   :  { %v160_v5 = vpop.permute.xlu1 %159 }
  0xbf   :  { %v170_v9 = vmul.f32 %v169_v61, %v160_v5 }
  0xc1   :  { %v172_v11 = vadd.f32 %v170_v9, %v156_v8 }
  0xc2   :  { %v164_v13 = vpop.permute.xlu1 %163 }
  0xc3   :  { %v178_v15 = vadd.f32 %v318_v10, %v172_v11  ;;  %v171_v16 = vmul.f32 %v169_v61, %v164_v13 }
  0xc5   :  { %v173_v18 = vadd.f32 %v171_v16, %v157_v14  ;;  %v180_v19 = vmax.f32 %v178_v15, 0.0 }
  0xc7   :  { %v179_v21 = vadd.f32 %v318_v10, %v173_v18  ;;  %v205_v20 = vmul.f32 %v321_v17, %v180_v19  ;;  %v186_v27 = vmul.f32 %v319_v26, %v180_v19 }
  0xc9   :  { %v207_v22 = vsel %vm188_vm0, %v205_v20, 0.0  ;;  %v181_v23 = vmax.f32 %v179_v21, 0.0  ;;  %v189_v28 = vsel %vm188_vm0, %v186_v27, 0.0  ;;  %v272_v20 = vand.u32 127, %v56_v12 }
  0xca   :  { %208 = vadd.xlane.f32.xlu0 %v207_v22 }
  0xcb   :  { %v206_v24 = vmul.f32 %v321_v17, %v181_v23  ;;  %v187_v29 = vmul.f32 %v319_v26, %v181_v23  ;;  %vm273_vm5 = vcmp.eq.s32.totalorder %v272_v20, 0  ;;  %vm274_vm6 = vcmp.eq.s32.totalorder %v272_v20, 1 }
  0xcd   :  { %v210_v25 = vsel %vm188_vm0, %v206_v24, 0.0  ;;  %v192_v30 = vsel %vm188_vm0, %v187_v29, 0.0 }
  0xce   :  { %211 = vadd.xlane.f32.xlu1 %v210_v25 }
  0xdf   :  { %251 = vrot.lane.b32.xlu1 %v453_v3, %s424_s0 }
  0xe0   :  { %249 = vrot.lane.b32.xlu0 %v449_v2, %s424_s0 }
  0xff   :  { %190 = vadd.xlane.f32.xlu0 %v189_v28 }
 0x103   :  { %193 = vadd.xlane.f32.xlu1 %v192_v30 }
 0x153   :  { %v209_v32 = vpop.xlane.xlu0 %208 }
 0x154   :  { %v213_v33 = vadd.f32 %v320_v31, %v209_v32 }
 0x156   :  { %v219_v34 = vmin.f32 %v213_v33, 20.0  ;;  %vm217_vm2 = vcmp.gt.f32.partialorder %v213_v33, 20.0 }
 0x157   :  { %v212_v35 = vpop.xlane.xlu1 %211  ;;  %v250_v54 = vpop.permute.xlu0 %249 }
 0x158   :  { %v221_v36 = vmul.f32 1.442695, %v219_v34  ;;  %v214_v37 = vadd.f32 %v320_v31, %v212_v35 }
 0x15a   :  { %356 = vpow2.f32 %v221_v36  ;;  %v220_v3 = vmin.f32 %v214_v37, 20.0  ;;  %vm218_vm4 = vcmp.gt.f32.partialorder %v214_v37, 20.0 }
 0x15b   :  { %v252_v61 = vpop.permute.xlu1 %251 }
 0x15c   :  { %v223_v38 = vmul.f32 1.442695, %v220_v3 }
 0x15e   :  { %358 = vpow2.f32 %v223_v38 }
 0x167   :  { %v357_v2 = vpop.eup %356 }
 0x168   :  { %v225_v39 = vadd.f32 1.0, %v357_v2  ;;  %v228_v42 = vmul.f32 -0.5, %v357_v2  ;;  %v231_v45 = vand.u32 2147483647, %v357_v2 }
 0x16a   :  { %360 = vlog2.f32 %v225_v39  ;;  %v229_v43 = vadd.f32 1.0, %v228_v42  ;;  %vm232_vm1 = vcmp.lt.f32.partialorder %v231_v45, 0.0004427343 }
 0x16b   :  { %v359_v40 = vpop.eup %358 }
 0x16c   :  { %v234_v41 = vadd.f32 1.0, %v359_v40  ;;  %v237_v44 = vmul.f32 -0.5, %v359_v40  ;;  %v230_v48 = vmul.f32 %v357_v2, %v229_v43  ;;  %v240_v50 = vand.u32 2147483647, %v359_v40 }
 0x16e   :  { %362 = vlog2.f32 %v234_v41  ;;  %v238_v49 = vadd.f32 1.0, %v237_v44  ;;  %vm241_vm3 = vcmp.lt.f32.partialorder %v240_v50, 0.0004427343 }
 0x170   :  { %v239_v57 = vmul.f32 %v359_v40, %v238_v49 }
 0x177   :  { %v361_v46 = vpop.eup %360 }
 0x178   :  { %v227_v47 = vmul.f32 0.6931472, %v361_v46 }
 0x17a   :  { %v233_v51 = vsel %vm232_vm1, %v230_v48, %v227_v47 }
 0x17b   :  { %v363_v52 = vpop.eup %362  ;;  %v243_v53 = vsel %vm217_vm2, %v213_v33, %v233_v51 }
 0x17c   :  { %v247_v55 = vadd.f32 0.1, %v243_v53  ;;  %v236_v56 = vmul.f32 0.6931472, %v363_v52 }
 0x17e   :  { %v255_v58 = vmul.f32 %v250_v54, %v247_v55  ;;  %v242_v59 = vsel %vm241_vm3, %v239_v57, %v236_v56 }
 0x17f   :  { %v244_v60 = vsel %vm218_vm4, %v214_v37, %v242_v59 }
 0x180   :  { %259 = vrot.lane.b32.xlu0 %v255_v58, %s425_s1  ;;  %v248_v62 = vadd.f32 0.1, %v244_v60 }
 0x182   :  { %v256_v63 = vmul.f32 %v252_v61, %v248_v62 }
 0x184   :  { %261 = vrot.lane.b32.xlu1 %v256_v63, %s425_s1 }
 0x188   :  { %v191_v4 = vpop.xlane.xlu0 %190 }
 0x189   :  { %v199_v5 = vadd.f32 %v320_v31, %v191_v4 }
 0x18b   :  { %364 = vtanh.f32 %v199_v5 }
 0x18c   :  { %v194_v6 = vpop.xlane.xlu1 %193 }
 0x18d   :  { %v200_v7 = vadd.f32 %v320_v31, %v194_v6 }
 0x18f   :  { %366 = vtanh.f32 %v200_v7 }
 0x198   :  { %v365_v8 = vpop.eup %364 }
 0x199   :  { %277 = vperm.xlu0 %350, %v365_v8   ;;  %v245_v10 = vmul.f32 2.0, %v365_v8 }
 0x19c   :  { %v367_v9 = vpop.eup %366 }
 0x19d   :  { %282 = vperm.xlu1 %351, %v367_v9   ;;  %353 = vset.pattern.permute.xlu0 %v416_v0  ;;  %v246_v15 = vmul.f32 2.0, %v367_v9 }
 0x19e   :  { %292 = vperm.xlu0 %353, %v244_v60  }
 0x1a1   :  { %352 = vset.pattern.permute.xlu1 %v416_v0 }
 0x1a2   :  { %287 = vperm.xlu1 %352, %v243_v53   ;;  %355 = vset.pattern.permute.xlu0 %v417_v1 }
 0x1a6   :  { %354 = vset.pattern.permute.xlu1 %v417_v1 }
 0x1f2   :  { %v260_v11 = vpop.permute.xlu0 %259 }
 0x1f3   :  { %v265_v13 = vadd.f32 %v260_v11, %v245_v10 }
 0x1f5   :  { %v322_v14 = vclamps-f32 %v265_v13, 2.0 }
 0x1f6   :  { %v262_v16 = vpop.permute.xlu1 %261 }
 0x1f7   :  { %v266_v17 = vadd.f32 %v262_v16, %v246_v15  ;;  %299 = vperm.xlu1 %354, %v322_v14  }
 0x1f9   :  { %v323_v18 = vclamps-f32 %v266_v17, 2.0 }
 0x1fb   :  { %304 = vperm.xlu1 %354, %v323_v18  }
 0x214   :  { %v278_v21 = vpop.permute.xlu0 %277 }
 0x218   :  { %v283_v19 = vpop.permute.xlu1 %282 }
 0x219   :  { %v293_v23 = vpop.permute.xlu0 %292 }
 0x21a   :  { %v296_v25 = vsel %vm274_vm6, %v283_v19, %v293_v23 }
 0x21d   :  { %v288_v0 = vpop.permute.xlu1 %287 }
 0x21e   :  { %v295_v22 = vsel %vm274_vm6, %v278_v21, %v288_v0 }
 0x272   :  { %v300_v1 = vpop.permute.xlu1 %299 }
 0x273   :  { %v307_v24 = vsel %vm273_vm5, %v300_v1, %v295_v22 }
 0x274   :  { %310 = vst.msk [vmem:[%s491_s2] sm:$0xff] %vm309_vm7, %v307_v24 }
 0x276   :  { %v305_v26 = vpop.permute.xlu1 %304 }
 0x277   :  { %v308_v27 = vsel %vm273_vm5, %v305_v26, %v296_v25 }
 0x278   :  { %311 = vst.msk [vmem:[%s491_s2 + $0x8] sm:$0xff] %vm309_vm7, %v308_v27 }
 0x279   :  { %316 = vsyncpa [#allocation3], 1 }
 0x27a   :  { %317 = vsyncpa [#allocation5], 1 }

</bundles_post_ra>
